<compile_context>
chip_gen: v7x
topology: tpu7x:2x2x1
jax: 0.10.0
libtpu: 0.0.40
codegen_flags: <defaults>
</compile_context>

<pallas_src>
import functools
import random

import jax
import jax.numpy as jnp
from jax.experimental import pallas as pl
from jax.experimental.pallas import tpu as pltpu


def _proto_kernel(idx_ref, p1_ref, p2_ref, g1_ref, g2_ref, q_ref,
                  out1_ref, out2_ref, *, scale, batch, tile_q):
    """One queue tile: scores for both probe sets + in-kernel column substitution.

    idx_ref : SMEM (1,) int32   -- queue write index (scalar-prefetched)
    p1/p2   : (B, D)  resident  -- probe features
    g1/g2   : (B, D)  resident  -- gallery features (only used for the fixup)
    q_ref   : (D, TQ) streamed  -- queue tile
    out1/2  : (B, TQ)           -- scaled cosine scores
    """
    j = pl.program_id(0)
    q = q_ref[...]

    s1 = jnp.dot(p1_ref[...], q, preferred_element_type=jnp.float32)
    s2 = jnp.dot(p2_ref[...], q, preferred_element_type=jnp.float32)
    out1_ref[...] = jnp.clip(s1, -1.0, 1.0) * scale
    out2_ref[...] = jnp.clip(s2, -1.0, 1.0) * scale

    # Patch columns [index, index + batch): output1 uses g2, output2 uses g1
    # (equivalent to the torch `queue[:, idx:idx+B] = g.T` before the matmul).
    idx = idx_ref[0]
    col0 = j * tile_q
    overlaps = jnp.logical_and(idx < col0 + tile_q, idx + batch > col0)

    @pl.when(overlaps)
    def _patch():
        col = col0 + jax.lax.broadcasted_iota(jnp.int32, (1, tile_q), 1)
        off = col - idx                                         # (1, TQ)
        in_win = jnp.logical_and(off >= 0, off < batch)         # (1, TQ)
        rows = jax.lax.broadcasted_iota(jnp.int32, (batch, tile_q), 0)
        onehot = jnp.where(jnp.logical_and(in_win, off == rows),
                           1.0, 0.0).astype(jnp.float32)        # (B, TQ)

        # c1[b, k] = <p1_b, g2_k>, c2[b, k] = <p2_b, g1_k>  (contraction on D)
        dn = (((1,), (1,)), ((), ()))
        c1 = jax.lax.dot_general(p1_ref[...], g2_ref[...], dn,
                                 preferred_element_type=jnp.float32)
        c2 = jax.lax.dot_general(p2_ref[...], g1_ref[...], dn,
                                 preferred_element_type=jnp.float32)

        fix1 = jnp.dot(c1, onehot, preferred_element_type=jnp.float32)
        fix2 = jnp.dot(c2, onehot, preferred_element_type=jnp.float32)

        out1_ref[...] = jnp.where(in_win, jnp.clip(fix1, -1.0, 1.0) * scale,
                                  out1_ref[...])
        out2_ref[...] = jnp.where(in_win, jnp.clip(fix2, -1.0, 1.0) * scale,
                                  out2_ref[...])


@functools.partial(jax.jit, static_argnames=("scale", "batch", "tile_q"))
def _fused_scores(index, p1, p2, g1, g2, queue, *, scale, batch, tile_q):
    B, D = p1.shape
    Dq, Q = queue.shape
    assert D == Dq and B == batch
    tile_q = min(tile_q, Q)                 # demo-sized queues: one full tile
    grid = (pl.cdiv(Q, tile_q),)            # partial last tile handled by Pallas

    kernel = functools.partial(_proto_kernel, scale=scale, batch=batch,
                               tile_q=tile_q)

    itm_q = queue.dtype.itemsize
    itm_p = p1.dtype.itemsize
    cost = pl.CostEstimate(
        flops=int(2 * 2 * B * D * Q),
        transcendentals=0,
        bytes_accessed=int(D * Q * itm_q + 4 * B * D * itm_p + 2 * B * Q * 4),
    )

    return pl.pallas_call(
        kernel,
        out_shape=(jax.ShapeDtypeStruct((B, Q), jnp.float32),
                   jax.ShapeDtypeStruct((B, Q), jnp.float32)),
        grid_spec=pltpu.PrefetchScalarGridSpec(
            num_scalar_prefetch=1,
            grid=grid,
            in_specs=[
                pl.BlockSpec((B, D), lambda j, idx: (0, 0)),       # p1 resident
                pl.BlockSpec((B, D), lambda j, idx: (0, 0)),       # p2 resident
                pl.BlockSpec((B, D), lambda j, idx: (0, 0)),       # g1 resident
                pl.BlockSpec((B, D), lambda j, idx: (0, 0)),       # g2 resident
                pl.BlockSpec((D, tile_q), lambda j, idx: (0, j)),  # queue tile
            ],
            out_specs=[
                pl.BlockSpec((B, tile_q), lambda j, idx: (0, j)),
                pl.BlockSpec((B, tile_q), lambda j, idx: (0, j)),
            ],
        ),
        compiler_params=pltpu.CompilerParams(
            dimension_semantics=("parallel",),
        ),
        cost_estimate=cost,
    )(index, p1, p2, g1, g2, queue)


class PrototypeJax:
    """JAX/Pallas port of the PyTorch `Prototype` module (loss_type='softmax')."""

    def __init__(self, feat_dim=512, queue_size=16384, scale=30.0, margin=0.0,
                 loss_type="softmax", compute_dtype=jnp.bfloat16, tile_q=1024,
                 key=None):
        self.queue_size = queue_size
        self.feat_dim = feat_dim
        self.scale = scale
        self.margin = margin
        self.loss_type = loss_type
        self.compute_dtype = compute_dtype
        self.tile_q = tile_q
        self.index = 0

        if key is None:
            key = jax.random.PRNGKey(0)
        # torch.rand(...).uniform_(-1,1).renorm_(2,1,1e-5).mul_(1e5)
        # => columns of (feat_dim, queue_size) L2-normalized to unit norm.
        q = jax.random.uniform(key, (feat_dim, queue_size),
                               minval=-1.0, maxval=1.0, dtype=jnp.float32)
        norms = jnp.sqrt(jnp.sum(q * q, axis=0, keepdims=True))
        self.queue = (q / jnp.maximum(norms, 1e-12)).astype(compute_dtype)

    def _update_queue(self, g, batch_size):
        g_cols = jax.lax.stop_gradient(g).T.astype(self.queue.dtype)
        # TODO(synk): this reallocates the full queue buffer; an
        # input_output_aliases pallas_call (or donated jit) would update in place.
        self.queue = jax.lax.dynamic_update_slice(self.queue, g_cols,
                                                  (0, self.index))
        self.index = (self.index + batch_size) % self.queue_size
        # TODO(synk): like the original, no circular wrap of columns when
        # index + batch_size > queue_size (dynamic_update_slice clamps).

    def forward(self, p1, g2, p2, g1, label):
        batch_size = p1.shape[0]
        g1 = jax.lax.stop_gradient(g1)
        g2 = jax.lax.stop_gradient(g2)
        dt = self.compute_dtype
        idx_arr = jnp.array([self.index], dtype=jnp.int32)

        out1, out2 = _fused_scores(
            idx_arr,
            p1.astype(dt), p2.astype(dt), g1.astype(dt), g2.astype(dt),
            self.queue,
            scale=float(self.scale), batch=int(batch_size),
            tile_q=int(self.tile_q))

        # TODO(synk): am_softmax / arc_softmax margin scatter on the label
        # column is not implemented (default loss_type='softmax' ignores it).

        if random.random() > 0.5:           # matches the torch random choice
            self._update_queue(g1, batch_size)
        else:
            self._update_queue(g2, batch_size)
        return out1, out2


if __name__ == "__main__":
    random.seed(0)
    B, D, Q = 8, 128, 512
    TILE_Q = 128  # small tile for the demo so several grid steps are exercised

    key = jax.random.PRNGKey(0)
    ks = jax.random.split(key, 6)

    def unit_rows(k, shape):
        x = jax.random.normal(k, shape, dtype=jnp.float32)
        return x / jnp.linalg.norm(x, axis=-1, keepdims=True)

    p1 = unit_rows(ks[0], (B, D))
    g2 = unit_rows(ks[1], (B, D))
    p2 = unit_rows(ks[2], (B, D))
    g1 = unit_rows(ks[3], (B, D))
    label = jax.random.randint(ks[4], (B,), 0, Q)

    def ref_scores(p, g, queue_stored, idx, scale, dtype):
        qm = jax.lax.dynamic_update_slice(
            queue_stored, g.T.astype(queue_stored.dtype), (0, idx))
        s = jnp.dot(p.astype(dtype), qm.astype(dtype),
                    preferred_element_type=jnp.float32)
        return jnp.clip(s, -1.0, 1.0) * scale

    # ---- default (bf16 storage/compute, f32 accumulation) ----
    proto = PrototypeJax(feat_dim=D, queue_size=Q, scale=30.0,
                         tile_q=TILE_Q, key=ks[5])
    q0, i0 = proto.queue, proto.index
    o1, o2 = proto.forward(p1, g2, p2, g1, label)
    jax.block_until_ready((o1, o2))
    r1 = ref_scores(p1, g2, q0, i0, 30.0, jnp.bfloat16)
    r2 = ref_scores(p2, g1, q0, i0, 30.0, jnp.bfloat16)
    assert o1.shape == (B, Q) and o2.shape == (B, Q)
    assert jnp.allclose(o1, r1, atol=1e-3, rtol=1e-3)
    assert jnp.allclose(o2, r2, atol=1e-3, rtol=1e-3)

    # second forward: substitution window [124, 132) straddles a tile boundary
    proto.index = 124
    q1, i1 = proto.queue, proto.index
    o1b, o2b = proto.forward(p2, g1, p1, g2, label)
    jax.block_until_ready((o1b, o2b))
    r1b = ref_scores(p2, g1, q1, i1, 30.0, jnp.bfloat16)
    r2b = ref_scores(p1, g2, q1, i1, 30.0, jnp.bfloat16)
    assert jnp.allclose(o1b, r1b, atol=1e-3, rtol=1e-3)
    assert jnp.allclose(o2b, r2b, atol=1e-3, rtol=1e-3)

    # ---- exact f32 path ----
    proto32 = PrototypeJax(feat_dim=D, queue_size=Q, scale=30.0, tile_q=TILE_Q,
                           compute_dtype=jnp.float32, key=ks[5])
    q2, i2 = proto32.queue, proto32.index
    o1c, o2c = proto32.forward(p1, g2, p2, g1, label)
    jax.block_until_ready((o1c, o2c))
    r1c = ref_scores(p1, g2, q2, i2, 30.0, jnp.float32)
    r2c = ref_scores(p2, g1, q2, i2, 30.0, jnp.float32)
    assert jnp.allclose(o1c, r1c, atol=1e-4, rtol=1e-4)
    assert jnp.allclose(o2c, r2c, atol=1e-4, rtol=1e-4)

    print("KERNEL_OK")
</pallas_src>

<mosaic_0001>
module attributes {stable_mosaic.version = 11 : i64} {
  func.func @_proto_kernel(%arg0: i32, %arg1: memref<1xi32, #tpu.memory_space<smem>>, %arg2: memref<8x128xbf16, #tpu.memory_space<vmem>>, %arg3: memref<8x128xbf16, #tpu.memory_space<vmem>>, %arg4: memref<8x128xbf16, #tpu.memory_space<vmem>>, %arg5: memref<8x128xbf16, #tpu.memory_space<vmem>>, %arg6: memref<128x128xbf16, #tpu.memory_space<vmem>>, %arg7: memref<8x128xf32, #tpu.memory_space<vmem>>, %arg8: memref<8x128xf32, #tpu.memory_space<vmem>>) attributes {dimension_semantics = [#tpu.dimension_semantics<parallel>], iteration_bounds = array<i64: 4>, scalar_prefetch = 1 : i64, scratch_operands = 0 : i64, tpu.core_type = #tpu.core_type<tc>, window_params = [{pipeline_mode = #tpu.pipeline_mode<synchronous>, transform_indices = @transform_0, window_bounds = array<i64: 8, 128>}, {pipeline_mode = #tpu.pipeline_mode<synchronous>, transform_indices = @transform_1, window_bounds = array<i64: 8, 128>}, {pipeline_mode = #tpu.pipeline_mode<synchronous>, transform_indices = @transform_2, window_bounds = array<i64: 8, 128>}, {pipeline_mode = #tpu.pipeline_mode<synchronous>, transform_indices = @transform_3, window_bounds = array<i64: 8, 128>}, {transform_indices = @transform_4, window_bounds = array<i64: 128, 128>}, {transform_indices = @transform_5, window_bounds = array<i64: 8, 128>}, {transform_indices = @transform_6, window_bounds = array<i64: 8, 128>}]} {
    %c0 = arith.constant 0 : index
    %c0_0 = arith.constant 0 : index
    %0 = vector.load %arg6[%c0, %c0_0] : memref<128x128xbf16, #tpu.memory_space<vmem>>, vector<128x128xbf16>
    %c0_1 = arith.constant 0 : index
    %c0_2 = arith.constant 0 : index
    %1 = vector.load %arg2[%c0_1, %c0_2] : memref<8x128xbf16, #tpu.memory_space<vmem>>, vector<8x128xbf16>
    %cst = arith.constant dense<0.000000e+00> : vector<8x128xf32>
    %2 = tpu.matmul %1, %0, %cst {dimension_numbers = #tpu.dot_dimension_numbers<[1], [0], [0], [1], [0, 0, 1, 1], [], []>} : vector<8x128xbf16>, vector<128x128xbf16>, vector<8x128xf32> -> vector<8x128xf32>
    %c0_3 = arith.constant 0 : index
    %c0_4 = arith.constant 0 : index
    %3 = vector.load %arg3[%c0_3, %c0_4] : memref<8x128xbf16, #tpu.memory_space<vmem>>, vector<8x128xbf16>
    %cst_5 = arith.constant dense<0.000000e+00> : vector<8x128xf32>
    %4 = tpu.matmul %3, %0, %cst_5 {dimension_numbers = #tpu.dot_dimension_numbers<[1], [0], [0], [1], [0, 0, 1, 1], [], []>} : vector<8x128xbf16>, vector<128x128xbf16>, vector<8x128xf32> -> vector<8x128xf32>
    %cst_6 = arith.constant -1.000000e+00 : f32
    %cst_7 = arith.constant 1.000000e+00 : f32
    %5 = vector.broadcast %cst_6 : f32 to vector<8x128xf32>
    %6 = arith.maximumf %5, %2 : vector<8x128xf32>
    %7 = vector.broadcast %cst_7 : f32 to vector<8x128xf32>
    %8 = arith.minimumf %7, %6 : vector<8x128xf32>
    %cst_8 = arith.constant 3.000000e+01 : f32
    %9 = vector.broadcast %cst_8 : f32 to vector<8x128xf32>
    %10 = arith.mulf %8, %9 : vector<8x128xf32>
    %c0_9 = arith.constant 0 : index
    %c0_10 = arith.constant 0 : index
    %11 = vector.load %arg7[%c0_9, %c0_10] : memref<8x128xf32, #tpu.memory_space<vmem>>, vector<8x128xf32>
    tpu.vector_store %arg7[%c0_9, %c0_10], %10 {strides = array<i32>} : memref<8x128xf32, #tpu.memory_space<vmem>>, vector<8x128xf32>,
    %cst_11 = arith.constant -1.000000e+00 : f32
    %cst_12 = arith.constant 1.000000e+00 : f32
    %12 = vector.broadcast %cst_11 : f32 to vector<8x128xf32>
    %13 = arith.maximumf %12, %4 : vector<8x128xf32>
    %14 = vector.broadcast %cst_12 : f32 to vector<8x128xf32>
    %15 = arith.minimumf %14, %13 : vector<8x128xf32>
    %cst_13 = arith.constant 3.000000e+01 : f32
    %16 = vector.broadcast %cst_13 : f32 to vector<8x128xf32>
    %17 = arith.mulf %15, %16 : vector<8x128xf32>
    %c0_14 = arith.constant 0 : index
    %c0_15 = arith.constant 0 : index
    %18 = vector.load %arg8[%c0_14, %c0_15] : memref<8x128xf32, #tpu.memory_space<vmem>>, vector<8x128xf32>
    tpu.vector_store %arg8[%c0_14, %c0_15], %17 {strides = array<i32>} : memref<8x128xf32, #tpu.memory_space<vmem>>, vector<8x128xf32>,
    %c0_16 = arith.constant 0 : index
    %19 = memref.load %arg1[%c0_16] : memref<1xi32, #tpu.memory_space<smem>>
    %c128_i32 = arith.constant 128 : i32
    %20 = arith.muli %arg0, %c128_i32 : i32
    %c128_i32_17 = arith.constant 128 : i32
    %21 = arith.addi %20, %c128_i32_17 : i32
    %22 = arith.cmpi slt, %19, %21 : i32
    %c8_i32 = arith.constant 8 : i32
    %23 = arith.addi %19, %c8_i32 : i32
    %24 = arith.cmpi sgt, %23, %20 : i32
    %25 = arith.andi %22, %24 : i1
    %26 = arith.extui %25 : i1 to i32
    %c0_i32 = arith.constant 0 : i32
    %27 = arith.cmpi ne, %26, %c0_i32 : i32
    scf.if %27 {
      %28 = tpu.iota {dimensions = array<i32: 1>} : vector<1x128xi32>
      %29 = vector.broadcast %20 : i32 to vector<1x128xi32>
      %30 = arith.addi %29, %28 : vector<1x128xi32>
      %31 = vector.broadcast %19 : i32 to vector<1x128xi32>
      %32 = arith.subi %30, %31 : vector<1x128xi32>
      %c0_i32_18 = arith.constant 0 : i32
      %33 = vector.broadcast %c0_i32_18 : i32 to vector<1x128xi32>
      %34 = arith.cmpi sge, %32, %33 : vector<1x128xi32>
      %c8_i32_19 = arith.constant 8 : i32
      %35 = vector.broadcast %c8_i32_19 : i32 to vector<1x128xi32>
      %36 = arith.cmpi slt, %32, %35 : vector<1x128xi32>
      %37 = arith.andi %34, %36 : vector<1x128xi1>
      %38 = tpu.iota {dimensions = array<i32: 0>} : vector<8x128xi32>
      %39 = vector.broadcast %32 : vector<1x128xi32> to vector<8x128xi32>
      %40 = arith.cmpi eq, %39, %38 : vector<8x128xi32>
      %41 = vector.broadcast %37 : vector<1x128xi1> to vector<8x128xi1>
      %42 = arith.andi %41, %40 : vector<8x128xi1>
      %cst_20 = arith.constant 1.000000e+00 : f32
      %cst_21 = arith.constant 0.000000e+00 : f32
      %43 = vector.broadcast %cst_20 : f32 to vector<8x128xf32>
      %44 = vector.broadcast %cst_21 : f32 to vector<8x128xf32>
      %45 = arith.select %42, %43, %44 : vector<8x128xi1>, vector<8x128xf32>
      %c0_22 = arith.constant 0 : index
      %c0_23 = arith.constant 0 : index
      %46 = vector.load %arg2[%c0_22, %c0_23] : memref<8x128xbf16, #tpu.memory_space<vmem>>, vector<8x128xbf16>
      %c0_24 = arith.constant 0 : index
      %c0_25 = arith.constant 0 : index
      %47 = vector.load %arg5[%c0_24, %c0_25] : memref<8x128xbf16, #tpu.memory_space<vmem>>, vector<8x128xbf16>
      %cst_26 = arith.constant dense<0.000000e+00> : vector<8x8xf32>
      %48 = tpu.matmul %46, %47, %cst_26 {dimension_numbers = #tpu.dot_dimension_numbers<[1], [1], [0], [0], [0, 0, 1, 0], [], []>} : vector<8x128xbf16>, vector<8x128xbf16>, vector<8x8xf32> -> vector<8x8xf32>
      %c0_27 = arith.constant 0 : index
      %c0_28 = arith.constant 0 : index
      %49 = vector.load %arg3[%c0_27, %c0_28] : memref<8x128xbf16, #tpu.memory_space<vmem>>, vector<8x128xbf16>
      %c0_29 = arith.constant 0 : index
      %c0_30 = arith.constant 0 : index
      %50 = vector.load %arg4[%c0_29, %c0_30] : memref<8x128xbf16, #tpu.memory_space<vmem>>, vector<8x128xbf16>
      %cst_31 = arith.constant dense<0.000000e+00> : vector<8x8xf32>
      %51 = tpu.matmul %49, %50, %cst_31 {dimension_numbers = #tpu.dot_dimension_numbers<[1], [1], [0], [0], [0, 0, 1, 0], [], []>} : vector<8x128xbf16>, vector<8x128xbf16>, vector<8x8xf32> -> vector<8x8xf32>
      %cst_32 = arith.constant dense<0.000000e+00> : vector<8x128xf32>
      %52 = tpu.matmul %48, %45, %cst_32 {dimension_numbers = #tpu.dot_dimension_numbers<[1], [0], [0], [1], [0, 0, 1, 1], [], []>} : vector<8x8xf32>, vector<8x128xf32>, vector<8x128xf32> -> vector<8x128xf32>
      %cst_33 = arith.constant dense<0.000000e+00> : vector<8x128xf32>
      %53 = tpu.matmul %51, %45, %cst_33 {dimension_numbers = #tpu.dot_dimension_numbers<[1], [0], [0], [1], [0, 0, 1, 1], [], []>} : vector<8x8xf32>, vector<8x128xf32>, vector<8x128xf32> -> vector<8x128xf32>
      %cst_34 = arith.constant -1.000000e+00 : f32
      %cst_35 = arith.constant 1.000000e+00 : f32
      %54 = vector.broadcast %cst_34 : f32 to vector<8x128xf32>
      %55 = arith.maximumf %54, %52 : vector<8x128xf32>
      %56 = vector.broadcast %cst_35 : f32 to vector<8x128xf32>
      %57 = arith.minimumf %56, %55 : vector<8x128xf32>
      %cst_36 = arith.constant 3.000000e+01 : f32
      %58 = vector.broadcast %cst_36 : f32 to vector<8x128xf32>
      %59 = arith.mulf %57, %58 : vector<8x128xf32>
      %c0_37 = arith.constant 0 : index
      %c0_38 = arith.constant 0 : index
      %60 = vector.load %arg7[%c0_37, %c0_38] : memref<8x128xf32, #tpu.memory_space<vmem>>, vector<8x128xf32>
      %61 = vector.shape_cast %37 : vector<1x128xi1> to vector<1x128xi1>
      %62 = vector.broadcast %61 : vector<1x128xi1> to vector<8x128xi1>
      %63 = arith.select %62, %59, %60 : vector<8x128xi1>, vector<8x128xf32>
      %c0_39 = arith.constant 0 : index
      %c0_40 = arith.constant 0 : index
      %64 = vector.load %arg7[%c0_39, %c0_40] : memref<8x128xf32, #tpu.memory_space<vmem>>, vector<8x128xf32>
      tpu.vector_store %arg7[%c0_39, %c0_40], %63 {strides = array<i32>} : memref<8x128xf32, #tpu.memory_space<vmem>>, vector<8x128xf32>,
      %cst_41 = arith.constant -1.000000e+00 : f32
      %cst_42 = arith.constant 1.000000e+00 : f32
      %65 = vector.broadcast %cst_41 : f32 to vector<8x128xf32>
      %66 = arith.maximumf %65, %53 : vector<8x128xf32>
      %67 = vector.broadcast %cst_42 : f32 to vector<8x128xf32>
      %68 = arith.minimumf %67, %66 : vector<8x128xf32>
      %cst_43 = arith.constant 3.000000e+01 : f32
      %69 = vector.broadcast %cst_43 : f32 to vector<8x128xf32>
      %70 = arith.mulf %68, %69 : vector<8x128xf32>
      %c0_44 = arith.constant 0 : index
      %c0_45 = arith.constant 0 : index
      %71 = vector.load %arg8[%c0_44, %c0_45] : memref<8x128xf32, #tpu.memory_space<vmem>>, vector<8x128xf32>
      %72 = vector.shape_cast %37 : vector<1x128xi1> to vector<1x128xi1>
      %73 = vector.broadcast %72 : vector<1x128xi1> to vector<8x128xi1>
      %74 = arith.select %73, %70, %71 : vector<8x128xi1>, vector<8x128xf32>
      %c0_46 = arith.constant 0 : index
      %c0_47 = arith.constant 0 : index
      %75 = vector.load %arg8[%c0_46, %c0_47] : memref<8x128xf32, #tpu.memory_space<vmem>>, vector<8x128xf32>
      tpu.vector_store %arg8[%c0_46, %c0_47], %74 {strides = array<i32>} : memref<8x128xf32, #tpu.memory_space<vmem>>, vector<8x128xf32>,
    } else {
    }
    return
  }
  func.func @transform_0(%arg0: i32, %arg1: memref<1xi32, #tpu.memory_space<smem>>) -> (i32, i32) {
    %c0_i32 = arith.constant 0 : i32
    %c0_i32_0 = arith.constant 0 : i32
    %c0_i32_1 = arith.constant 0 : i32
    return %c0_i32, %c0_i32_0 : i32, i32
  }
  func.func @transform_1(%arg0: i32, %arg1: memref<1xi32, #tpu.memory_space<smem>>) -> (i32, i32) {
    %c0_i32 = arith.constant 0 : i32
    %c0_i32_0 = arith.constant 0 : i32
    %c0_i32_1 = arith.constant 0 : i32
    return %c0_i32, %c0_i32_0 : i32, i32
  }
  func.func @transform_2(%arg0: i32, %arg1: memref<1xi32, #tpu.memory_space<smem>>) -> (i32, i32) {
    %c0_i32 = arith.constant 0 : i32
    %c0_i32_0 = arith.constant 0 : i32
    %c0_i32_1 = arith.constant 0 : i32
    return %c0_i32, %c0_i32_0 : i32, i32
  }
  func.func @transform_3(%arg0: i32, %arg1: memref<1xi32, #tpu.memory_space<smem>>) -> (i32, i32) {
    %c0_i32 = arith.constant 0 : i32
    %c0_i32_0 = arith.constant 0 : i32
    %c0_i32_1 = arith.constant 0 : i32
    return %c0_i32, %c0_i32_0 : i32, i32
  }
  func.func @transform_4(%arg0: i32, %arg1: memref<1xi32, #tpu.memory_space<smem>>) -> (i32, i32) {
    %c0_i32 = arith.constant 0 : i32
    %c0_i32_0 = arith.constant 0 : i32
    return %c0_i32, %arg0 : i32, i32
  }
  func.func @transform_5(%arg0: i32, %arg1: memref<1xi32, #tpu.memory_space<smem>>) -> (i32, i32) {
    %c0_i32 = arith.constant 0 : i32
    %c0_i32_0 = arith.constant 0 : i32
    return %c0_i32, %arg0 : i32, i32
  }
  func.func @transform_6(%arg0: i32, %arg1: memref<1xi32, #tpu.memory_space<smem>>) -> (i32, i32) {
    %c0_i32 = arith.constant 0 : i32
    %c0_i32_0 = arith.constant 0 : i32
    return %c0_i32, %arg0 : i32, i32
  }
}

</mosaic_0001>

<bundles_post_ra>
// kernel: _fused_scores.1
= control target key start
LH: loop header
LB: loop body
LE: loop exit
PB: predicated region body
PF: predicated region fallthrough
CT: control target
= control target key end

     0   :  { %s1577_s0 = inlined_call_operand.<no memory space> [shape: s32[1], index: 0, kind: input, shape index: {}]   ;;  %s1578_s1 = inlined_call_operand.hbm [shape: bf16[8,128], index: 1, kind: input, shape index: {}]   ;;  %s1579_s2 = inlined_call_operand.vmem [shape: bf16[8,128], index: 2, kind: input, shape index: {}]   ;;  %s1580_s3 = inlined_call_operand.vmem [shape: bf16[8,128], index: 3, kind: input, shape index: {}]   ;;  %s1581_s4 = inlined_call_operand.vmem [shape: bf16[8,128], index: 4, kind: input, shape index: {}]   ;;  %s1582_s5 = inlined_call_operand.hbm [shape: bf16[128,512], index: 5, kind: input, shape index: {}]   ;;  %s1583_s6 = inlined_call_operand.hbm [shape: f32[8,512], index: 6, kind: output, shape index: {0}]   ;;  %s1584_s7 = inlined_call_operand.hbm [shape: f32[8,512], index: 7, kind: output, shape index: {1}]  }
   0x1   :  { %13 = sst [smem:[#allocation3]] %s1577_s0 }
   0x2   :  { %14 = vsyncpa [#allocation5], 0 }
   0x3   :  { %15 = vsyncpa [#allocation8], 0 }
   0x4   :  { %17 = vsyncpa [#allocation8 + $0x1], 0 }
   0x5   :  { %18 = vsyncpa [#allocation6], 0 }
   0x6   :  { %20 = vsyncpa [#allocation6 + $0x1], 0 }
   0x7   :  { %21 = vsyncpa [#allocation11], 0 }
   0x8   :  { %23 = vsyncpa [#allocation11 + $0x1], 0  ;;  %s1282_s26 = smov 0   ;;  %s1284_s27 = smov 0  }
   0x9   :  { %s1286_s28 = smov 0   ;;  %s1288_s29 = smov 0  }
   0xa LB: > { %s1303_s0 = sadd.s32 4294967295, %s1225_s29   ;;  %s865_s30 = sadd.s32 4294967294, %s1225_s29   ;;  %s1225_s29 = sphi %s1288_s29, %s1613_s29   ;;  %s1221_s28 = sphi %s1286_s28, %s1612_s28   ;;  %s1217_s27 = sphi %s1284_s27, %s1611_s27   ;;  %s1213_s26 = sphi %s1282_s26, %s1610_s26  }
   0xb   : > { %s1307_s8 = sadd.s32 1, %s1225_s29   ;;  %s120_s9 = sadd.s32 1, %s1221_s28 }
   0xc   : > { %s117_s10 = ssub.s32 %s1225_s29, %s1307_s8  ;;  %p127_p0 = scmp.ne.s32.totalorder %s1221_s28, %s1217_s27 }
   0xd   : > { %p118_p1 = scmp.eq.s32.totalorder %s117_s10, 0  ;;  %p128_p2 = scmp.eq.s32.totalorder %s1225_s29, 0 }
   0xe   : > { %p133_p3 = scmp.ne.s32.totalorder %s1217_s27, %s1213_s26  ;;  %p1585_p4 = scmp.eq.s32.totalorder %s1303_s0, 0 }
   0xf   : > { %s1319_s11 = scalar_select %p118_p1, %s1221_s28, %s120_s9  }
  0x10   : > { %p1321_p5 = por %p128_p2, %p127_p0  ;;  %p1327_p6 = por %p1585_p4, %p133_p3 }
  0x11   : > { %1590 = sst [smem:[#allocation16_spill]] %s1319_s11  ;;  %p157_p7 = scmp.eq.s32.totalorder %s1303_s0, 3 }
  0x12   : > { %s1592_s13 = scalar_select %p1327_p6, 1, 0 }
  0x13   : > { %p163_p8 = scmp.eq.s32.totalorder %s865_s30, 3  ;;  %p866_p9 = scmp.ge.s32.totalorder %s1225_s29, 1 }
  0x14   : > { %p196_p10 = scmp.lt.s32.totalorder %s1225_s29, 5  ;;  %p1334_p11 = por %p157_p7, %p127_p0 }
  0x15   : > { %p1338_p12 = por %p163_p8, %p133_p3  ;;  %s1227_s17 = smov [#allocation4]  }
  0x16   : > { %s1593_s14 = scalar_select %p1334_p11, 1, 0 }
  0x17   : > { %s1594_s15 = scalar_select %p1338_p12, 1, 0 }
  0x18   : > { %p1342_p13 = pnand %p866_p9, %p196_p10  ;;  %s209_s18 = sshll.u32 %s1227_s17, 4  ;;  %s210_s18 = int_to_ptr.vmem [resolvable:$true] %s209_s18 }
  0x19   : > { %p1013_p2 = scmp.lt.s32.totalorder %s1225_s29, 4  ;;  %s229_s20 = sand.u32 1, %s1221_s28  }
  0x1a   : > { %s1595_s16 = scalar_select %p1342_p13, 1, 0 }
  0x1b   : > { %p997_p1 = pneg %p1342_p13  ;;  %p1358_p3 = pnand %p1013_p2, %p1321_p5 }
  0x1c   : > { %s869_s22 = sshll.u32 %s229_s20, 6  ;;  %s1065_s25 = scalar_lea.hbm %s1578_s1, 64 }
  0x1d   : > { %p1351_p0 = pnand %p997_p1, %p1585_p4  ;;  %p1066_p7 = scmp.ne.s32.totalorder %s1578_s1, %s1065_s25 }
  0x1e   : > { %s1597_s21 = scalar_select %p1358_p3, 1, 0 }
  0x1f   : > { %p1067_p8 = pneg %p1351_p0  ;;  %p1072_p5 = scmp.lt.u32.totalorder %s1065_s25, %s1578_s1 }
  0x21   : > { %p1068_p9 = pnand %p1067_p8, %p1066_p7 }
  0x23   : > { %p1069_p10 = pneg %p1068_p9 }
  0x25   : > { %p1074_p1 = pnand %p1072_p5, %p1069_p10 }
  0x27   : > { %1077 = shalt.err (!%p1074_p1)
}
  0x28   : > { %s1078_s12 = scalar_lea.vmem %s210_s18, 64  ;;  %p1086_p11 = scmp.lt.s32.totalorder %s210_s18, %s210_s18 }
  0x29   : > { %p1079_p2 = scmp.ne.s32.totalorder %s210_s18, %s1078_s12  ;;  %p1087_p6 = scmp.lt.s32.totalorder %s1078_s12, %s1078_s12 }
  0x2b   : > { %p1081_p4 = pnand %p1079_p2, %p1067_p8  ;;  %p1088_p13 = por %p1087_p6, %p1086_p11 }
  0x2d   : > { %p1082_p12 = pneg %p1081_p4 }
  0x2f   : > { %p1089_p3 = pnand %p1088_p13, %p1082_p12 }
  0x31   : > { %1092 = shalt.err (!%p1089_p3)
}
  0x32   : > { %1000 = dma.hbm_to_vmem [thread:$0]  (!%p1351_p0), %s1578_s1, 64, %s210_s18, [#allocation5]  }
  0x33   : > { %s870_s25 = sshll.u32 %s1225_s29, 6  ;;  %s233_s30 = scalar_lea.vmem [#allocation7], %s869_s22 }
  0x34   : > { %s239_s9 = sshll.u32 %s233_s30, 4  ;;  %s1382_s11 = scalar_lea.hbm %s1582_s5, %s870_s25  ;;  %s1384_s9 = int_to_ptr.vmem [resolvable:$true] %s239_s9 }
  0x35   : > { %s1386_s19 = scalar_lea.sflag [#allocation8], %s229_s20  ;;  %s1093_s12 = scalar_lea.hbm %s1382_s11, 1024 }
  0x36   : > { %p1094_p4 = scmp.ne.s32.totalorder %s1382_s11, %s1093_s12  ;;  %p1598_p6 = scmp.ne.s32.totalorder %s1597_s21, 0 }
  0x37   : > { %s1098_s23 = scalar_lea.hbm %s1582_s5, 4096  ;;  %p1099_p0 = scmp.lt.u32.totalorder %s1382_s11, %s1582_s5 }
  0x38   : > { %p1095_p11 = pneg %p1598_p6  ;;  %p1100_p3 = scmp.lt.u32.totalorder %s1098_s23, %s1093_s12 }
  0x39   : > { %p1102_p8 = scmp.lt.u32.totalorder %s1093_s12, %s1382_s11 }
  0x3a   : > { %p1096_p12 = pnand %p1095_p11, %p1094_p4  ;;  %p1101_p7 = por %p1100_p3, %p1099_p0 }
  0x3c   : > { %p1097_p13 = pneg %p1096_p12  ;;  %p1103_p9 = por %p1102_p8, %p1101_p7 }
  0x3e   : > { %p1104_p10 = pnand %p1103_p9, %p1097_p13 }
  0x40   : > { %1107 = shalt.err (!%p1104_p10)
}
  0x41   : > { %s1108_s20 = scalar_lea.vmem %s1384_s9, 1024  ;;  %s1228_s30 = smov [#allocation7]  }
  0x42   : > { %p1109_p5 = scmp.ne.s32.totalorder %s1384_s9, %s1108_s20  ;;  %s1113_s10 = sshll.u32 %s1228_s30, 4  ;;  %s1114_s10 = int_to_ptr.vmem [resolvable:$false] %s1113_s10 }
  0x43   : > { %s1115_s17 = scalar_lea.vmem %s1114_s10, 2048  ;;  %p1116_p4 = scmp.lt.s32.totalorder %s1384_s9, %s1114_s10 }
  0x44   : > { %p1111_p1 = pnand %p1109_p5, %p1095_p11  ;;  %p1117_p12 = scmp.lt.s32.totalorder %s1115_s17, %s1108_s20 }
  0x46   : > { %p1112_p2 = pneg %p1111_p1  ;;  %p1118_p0 = por %p1117_p12, %p1116_p4 }
  0x48   : > { %p1119_p3 = pnand %p1118_p0, %p1112_p2 }
  0x4a   : > { %1122 = shalt.err (!%p1119_p3)
}
  0x4b   : > { %s1229_s12 = smov 256   ;;  %s1230_s18 = smov 64  }
  0x4c   : > { %s1231_s22 = smov 4   ;;  %p1599_p11 = scmp.ne.s32.totalorder %s1595_s16, 0 }
  0x4d   : > { %1004 = dma.hbm_to_vmem [thread:$0]  (!%p1598_p6), %s1382_s11, 1024, %s1384_s9, %s1386_s19, %s1229_s12, %s1230_s18, %s1231_s22  }
  0x4e   : > { %251 = sbr.rel (%p1599_p11) target bundleno = 816 (0x330), region = 40  ;;  %p1600_p13 = scmp.eq.s32.totalorder (!%p1599_p11), %s1303_s0, 0 }
  0x55   : > { %1196 = dma.done.wait (%p1600_p13), [#allocation5], 64   ;;  %p1601_p7 = pmov %p1600_p13 }
  0x56   : > { %s1421_s23 = sand.u32 1, %s1217_s27   ;;  %p1602_p6 = scmp.ne.s32.totalorder %s1592_s13, 0 }
  0x57   : > { %1198 = vsyncadd (%p1601_p7), [#allocation5], 4294967232  ;;  %s873_s24 = sshll.u32 %s1421_s23, 6  ;;  %s258_s25 = scalar_lea.sflag [#allocation8], %s1421_s23 }
  0x58   : > { %s1425_s20 = scalar_lea.vmem [#allocation7], %s873_s24 }
  0x59   : > { %1200 = dma.done.wait (%p1602_p6), %s258_s25, 1024  }
  0x5a   : > { %1202 = vsyncadd (%p1602_p6), %s258_s25, 4294966272  ;;  %s1431_s11 = sld [smem:[#allocation3]]  ;;  %s1434_s16 = sshll.u32 %s1303_s0, 7  ;;  %v1232_v0 = vmov 0.0   ;;  %vm1233_vm0 = vmmov 0   ;;  %v1057_v1 = vld [vmem:[%s1425_s20] sm:$0xff]  }
  0x5b   : > { %925 = vmatprep.subr.bf16.mxu0 %v1232_v0  ;;  %945 = vmatprep.subr.bf16.mxu1 %v1232_v0  ;;  %s452_s13 = sadd.s32 128, %s1434_s16  ;;  %v1058_v2 = vld [vmem:[%s1425_s20 + $0x8] sm:$0xff]   ;;  %v1059_v3 = vld [vmem:[%s1425_s20 + $0x10] sm:$0xff]   ;;  %v1060_v4 = vld [vmem:[%s1425_s20 + $0x18] sm:$0xff]   ;;  %s874_s10 = sshll.u32 %s1421_s23, 3 }
  0x5c   : > { %941 = vmatprep.mubr.msk.bf16.mxu0 %vm1233_vm0, %v1232_v0  ;;  %961 = vmatprep.mubr.msk.bf16.mxu1 %vm1233_vm0, %v1232_v0  ;;  %v1061_v5 = vld [vmem:[%s1425_s20 + $0x20] sm:$0xff]   ;;  %v1062_v6 = vld [vmem:[%s1425_s20 + $0x28] sm:$0xff]   ;;  %v1063_v7 = vld [vmem:[%s1425_s20 + $0x30] sm:$0xff]   ;;  %s1464_s17 = scalar_lea.vmem [#allocation9], %s874_s10  ;;  %s1467_s12 = scalar_lea.vmem [#allocation10], %s874_s10 }
  0x5d   : > { %926 = vmatpush3.bf16.msra.mxu0 %v1057_v1  ;;  %946 = vmatpush3.bf16.msra.mxu1 %v1057_v1  ;;  %v1064_v8 = vld [vmem:[%s1425_s20 + $0x38] sm:$0xff]  }
  0x5e   : > { %927 = vmatprep.subr.bf16.mxu0 %v1232_v0  ;;  %947 = vmatprep.subr.bf16.mxu1 %v1232_v0  ;;  %v312_v9 = vld [vmem:[#allocation4] sm:$0xf] }
  0x5f   : > { %v401_v10 = vld [vmem:[%s1579_s2] sm:$0xf] }
  0x60   : > { %p1438_p8 = scmp.lt.s32.totalorder %s1431_s11, %s452_s13  ;;  %s454_s9 = sadd.s32 8, %s1431_s11 }
  0x61   : > { %p1445_p9 = scmp.gt.s32.totalorder %s454_s9, %s1434_s16  ;;  %928 = vmatpush3.bf16.msra.mxu0 %v1058_v2  ;;  %948 = vmatpush3.bf16.msra.mxu1 %v1058_v2 }
  0x62   : > { %929 = vmatprep.subr.bf16.mxu0 %v1232_v0  ;;  %949 = vmatprep.subr.bf16.mxu1 %v1232_v0 }
  0x63   : > { %p456_p10 = pnand %p1445_p9, %p1438_p8 }
  0x64   : > { %v477_v23 = vld [vmem:[%s1581_s4] sm:$0xf] (!%p456_p10)  ;;  %v460_v25 = vlaneseq (!%p456_p10)  ;;  %v1234_v26 = vmov (!%p456_p10), 0.0   ;;  %v462_v27 = vstv (!%p456_p10), %s1434_s16  ;;  %vm1235_vm1 = vmmov (!%p456_p10), 0  }
  0x65   : > { %930 = vmatpush3.bf16.msra.mxu0 %v1059_v3  ;;  %950 = vmatpush3.bf16.msra.mxu1 %v1059_v3  ;;  %v519_v24 = vld [vmem:[%s1580_s3] sm:$0xf] (!%p456_p10)  ;;  %v464_v29 = vstv (!%p456_p10), %s1431_s11  ;;  %v1236_v36 = vmov (!%p456_p10), 1.0   ;;  %vm560_vm7 = vcmask (!%p456_p10), 64512  }
  0x66   : > { %931 = vmatprep.subr.bf16.mxu0 %v1232_v0  ;;  %951 = vmatprep.subr.bf16.mxu1 %v1232_v0  ;;  %v461_v28 = vand.u32 (!%p456_p10), 127, %v460_v25  ;;  %v470_v31 = vshrl.u32 (!%p456_p10), %v460_v25, 7  ;;  %v476_v32 = vld [vmem:[#allocation4] sm:$0xf] (!%p456_p10) }
  0x67   : > { %v518_v33 = vld [vmem:[%s1579_s2] sm:$0xf] (!%p456_p10) }
  0x68   : > { %v463_v30 = vadd.s32 (!%p456_p10), %v462_v27, %v461_v28 }
  0x69   : > { %932 = vmatpush3.bf16.msra.mxu0 %v1060_v4  ;;  %952 = vmatpush3.bf16.msra.mxu1 %v1060_v4 }
  0x6a   : > { %933 = vmatprep.subr.bf16.mxu0 %v1232_v0  ;;  %953 = vmatprep.subr.bf16.mxu1 %v1232_v0  ;;  %v465_v34 = vsub.s32 (!%p456_p10), %v463_v30, %v464_v29 }
  0x6c   : > { %vm466_vm2 = vcmp.ge.s32.totalorder (!%p456_p10), %v465_v34, 0  ;;  %vm467_vm3 = vcmp.lt.s32.totalorder (!%p456_p10), %v465_v34, 8  ;;  %vm471_vm4 = vcmp.eq.s32.totalorder (!%p456_p10), %v465_v34, %v470_v31 }
  0x6d   : > { %934 = vmatpush3.bf16.msra.mxu0 %v1061_v5  ;;  %954 = vmatpush3.bf16.msra.mxu1 %v1061_v5  ;;  %vm1488_vm5 = vmand (!%p456_p10), %vm466_vm2, %vm467_vm3 }
  0x6e   : > { %935 = vmatprep.subr.bf16.mxu0 %v1232_v0  ;;  %955 = vmatprep.subr.bf16.mxu1 %v1232_v0  ;;  %vm474_vm6 = vmand (!%p456_p10), %vm1488_vm5, %vm471_vm4 }
  0x71   : > { %936 = vmatpush3.bf16.msra.mxu0 %v1062_v6  ;;  %956 = vmatpush3.bf16.msra.mxu1 %v1062_v6 }
  0x72   : > { %937 = vmatprep.subr.bf16.mxu0 %v1232_v0  ;;  %957 = vmatprep.subr.bf16.mxu1 %v1232_v0 }
  0x75   : > { %938 = vmatpush3.bf16.msra.mxu0 %v1063_v7  ;;  %958 = vmatpush3.bf16.msra.mxu1 %v1063_v7 }
  0x76   : > { %939 = vmatprep.subr.bf16.mxu0 %v1232_v0  ;;  %959 = vmatprep.subr.bf16.mxu1 %v1232_v0 }
  0x79   : > { %940 = vmatpush3.bf16.msra.mxu0 %v1064_v8  ;;  %960 = vmatpush3.bf16.msra.mxu1 %v1064_v8 }
  0x7a   : > { %965 = vmatprep.subr.bf16.mxu0 (!%p456_p10), %v1234_v26  ;;  %971 = vmatprep.subr.bf16.mxu1 (!%p456_p10), %v1234_v26 }
  0x7c   : > { %942 = vmatmul.mubr.bf16.vlgmr.msra.gmra.mrb[0].mxu0 %v312_v9  ;;  %962 = vmatmul.mubr.bf16.vlgmr.msra.gmra.mrb[0].mxu1 %v401_v10 }
  0x7d   : > { %967 = vmatprep.mubr.msk.bf16.mxu0 (!%p456_p10), %vm1235_vm1, %v1234_v26  ;;  %973 = vmatprep.mubr.msk.bf16.mxu1 (!%p456_p10), %vm1235_vm1, %v1234_v26 }
  0x82   : > { %966 = vmatpush3.bf16.xpose.msra.mxu0 (!%p456_p10), %v477_v23  ;;  %972 = vmatpush3.bf16.xpose.msra.mxu1 (!%p456_p10), %v519_v24 }
  0x83   : > { %977 = vmatprep.subr.mxu0 (!%p456_p10), %v1234_v26  ;;  %982 = vmatprep.subr.mxu1 (!%p456_p10), %v1234_v26 }
 0x14e   : > { %459 = sbr.rel (%p456_p10) target bundleno = 768 (0x300), region = 52 }
 0x14f   : > { %v395_v11 = vpop.f32.mrb[0].mxu0  ;;  %v436_v12 = vpop.f32.mrb[0].mxu1 }
 0x150   : > { %v884_v13 = vclamps-f32 %v395_v11, 1.0  ;;  %v885_v14 = vclamps-f32 %v436_v12, 1.0  ;;  %v943_v15 = vpop.f32.mrb[1].mxu0  ;;  %v963_v16 = vpop.f32.mrb[1].mxu1 }
 0x151   : > { %v398_v17 = vpop.f32.mrb[2].mxu0  ;;  %v439_v18 = vpop.f32.mrb[2].mxu1 }
 0x152   : > { %v444_v19 = vmul.f32 30.0, %v884_v13  ;;  %v448_v20 = vmul.f32 30.0, %v885_v14  ;;  %v944_v21 = vpop.f32.mrb[3].mxu0  ;;  %v964_v22 = vpop.f32.mrb[3].mxu1  ;;  %968 = vmatmul.mubr.bf16.vlgmr.msra.gmra.mrb[0].mxu0 (!%p456_p10), %v476_v32  ;;  %974 = vmatmul.mubr.bf16.vlgmr.msra.gmra.mrb[0].mxu1 (!%p456_p10), %v518_v33 }
 0x153   : > { %979 = vmatprep.mubr.msk.f32.mxu0 (!%p456_p10), %vm1235_vm1, %v1234_v26  ;;  %984 = vmatprep.mubr.msk.f32.mxu1 (!%p456_p10), %vm1235_vm1, %v1234_v26 }
 0x154   : > { %445 = vst [vmem:[%s1464_s17] sm:$0xff] %v444_v19  ;;  %449 = vst [vmem:[%s1467_s12] sm:$0xff] %v448_v20  ;;  %978 = vmatpush3.msk.msra.mxu0 (!%p456_p10), %vm474_vm6, %v1236_v36  ;;  %983 = vmatpush3.msk.msra.mxu1 (!%p456_p10), %vm474_vm6, %v1236_v36 }
 0x15b   : > { %v710_v51 = vld [vmem:[%s1464_s17] sm:$0xff]  ;;  %v716_v52 = vld [vmem:[%s1467_s12] sm:$0xff] }
 0x225   : > { %v512_v37 = vpop.f32.mrb[0].mxu0  ;;  %v554_v38 = vpop.f32.mrb[0].mxu1 }
 0x226   : > { %v969_v39 = vpop.f32.mrb[1].mxu0  ;;  %v975_v40 = vpop.f32.mrb[1].mxu1  ;;  %980 = vmatmul.mubr.msk.f32.vlgmr.msra.gmra.mrb[4].mxu0 %vm560_vm7, %v512_v37  ;;  %985 = vmatmul.mubr.msk.f32.vlgmr.msra.gmra.mrb[4].mxu1 %vm560_vm7, %v554_v38 }
 0x227   : > { %v515_v41 = vpop.f32.mrb[2].mxu0  ;;  %v557_v42 = vpop.f32.mrb[2].mxu1 }
 0x228   : > { %v970_v43 = vpop.f32.mrb[3].mxu0  ;;  %v976_v44 = vpop.f32.mrb[3].mxu1 }
 0x2f9   : > { %v630_v45 = vpop.f32.mrb[4].mxu0  ;;  %v703_v46 = vpop.f32.mrb[4].mxu1 }
 0x2fa   : > { %v891_v47 = vclamps-f32 %v630_v45, 1.0  ;;  %v892_v48 = vclamps-f32 %v703_v46, 1.0  ;;  %v981_v49 = vpop.f32.mrb[5].mxu0  ;;  %v986_v50 = vpop.f32.mrb[5].mxu1 }
 0x2fc   : > { %v709_v53 = vmul.f32 30.0, %v891_v47  ;;  %v715_v54 = vmul.f32 30.0, %v892_v48 }
 0x2fe   : > { %v711_v55 = vsel %vm1488_vm5, %v709_v53, %v710_v51  ;;  %v717_v56 = vsel %vm1488_vm5, %v715_v54, %v716_v52 }
 0x2ff   : > { %712 = vst [vmem:[%s1464_s17] sm:$0xff] %v711_v55  ;;  %718 = vst [vmem:[%s1467_s12] sm:$0xff] %v717_v56 }
 0x300 PF: > { %s1508_s9 = scalar_lea.hbm %s1583_s6, %s1434_s16  ;;  %s738_s0 = sshll.u32 %s1464_s17, 4  ;;  %s1511_s0 = int_to_ptr.vmem [resolvable:$true] %s738_s0 }
 0x301   : > { %s1517_s10 = scalar_lea.hbm %s1584_s7, %s1434_s16  ;;  %s720_s18 = scalar_lea.sflag [#allocation6], %s1421_s23 }
 0x302   : > { %s1123_s22 = scalar_lea.vmem %s1511_s0, 128  ;;  %p1607_p1 = scmp.ne.s32.totalorder %s1593_s14, 0 }
 0x303   : > { %p1124_p5 = scmp.ne.s32.totalorder %s1511_s0, %s1123_s22  ;;  %s1237_s24 = smov [#allocation9]  }
 0x304   : > { %s1127_s25 = sshll.u32 %s1237_s24, 4  ;;  %s1128_s25 = int_to_ptr.vmem [resolvable:$false] %s1127_s25 }
 0x305   : > { %p1125_p2 = pnand %p1124_p5, %p1607_p1  ;;  %s1129_s17 = scalar_lea.vmem %s1128_s25, 256 }
 0x306   : > { %p1130_p12 = scmp.lt.s32.totalorder %s1511_s0, %s1128_s25  ;;  %p1131_p0 = scmp.lt.s32.totalorder %s1129_s17, %s1123_s22 }
 0x307   : > { %p1126_p4 = pneg %p1125_p2 }
 0x308   : > { %p1132_p3 = por %p1131_p0, %p1130_p12 }
 0x30a   : > { %p1133_p11 = pnand %p1132_p3, %p1126_p4 }
 0x30c   : > { %1136 = shalt.err (!%p1133_p11)
}
 0x30d   : > { %s1137_s16 = scalar_lea.hbm %s1508_s9, 128  ;;  %s1141_s11 = scalar_lea.hbm %s1583_s6, 512 }
 0x30e   : > { %p1138_p13 = scmp.ne.s32.totalorder %s1508_s9, %s1137_s16  ;;  %p1142_p8 = scmp.lt.u32.totalorder %s1508_s9, %s1583_s6 }
 0x30f   : > { %p1143_p9 = scmp.lt.u32.totalorder %s1141_s11, %s1137_s16  ;;  %p1145_p5 = scmp.lt.u32.totalorder %s1137_s16, %s1508_s9 }
 0x310   : > { %p1139_p7 = pnand %p1138_p13, %p1607_p1 }
 0x311   : > { %p1144_p10 = por %p1143_p9, %p1142_p8 }
 0x312   : > { %p1140_p6 = pneg %p1139_p7 }
 0x313   : > { %p1146_p2 = por %p1145_p5, %p1144_p10 }
 0x315   : > { %p1147_p4 = pnand %p1146_p2, %p1140_p6 }
 0x317   : > { %1150 = shalt.err (!%p1147_p4)
}
 0x318   : > { %993 = dma.vmem_to_hbm [thread:$0]  (%p1607_p1), %s1511_s0, 128, %s1508_s9, %s720_s18  }
 0x319   : > { %s751_s30 = sshll.u32 %s1467_s12, 4  ;;  %s725_s22 = scalar_lea.sflag [#allocation11], %s1421_s23  ;;  %s752_s30 = int_to_ptr.vmem [resolvable:$true] %s751_s30 }
 0x31a   : > { %s1151_s24 = scalar_lea.vmem %s752_s30, 128  ;;  %s1238_s25 = smov [#allocation10]  }
 0x31b   : > { %p1152_p12 = scmp.ne.s32.totalorder %s752_s30, %s1151_s24  ;;  %s1155_s17 = sshll.u32 %s1238_s25, 4  ;;  %s1156_s17 = int_to_ptr.vmem [resolvable:$false] %s1155_s17 }
 0x31c   : > { %s1157_s16 = scalar_lea.vmem %s1156_s17, 256  ;;  %p1158_p11 = scmp.lt.s32.totalorder %s752_s30, %s1156_s17 }
 0x31d   : > { %p1153_p0 = pnand %p1152_p12, %p1607_p1  ;;  %p1159_p13 = scmp.lt.s32.totalorder %s1157_s16, %s1151_s24 }
 0x31f   : > { %p1154_p3 = pneg %p1153_p0  ;;  %p1160_p7 = por %p1159_p13, %p1158_p11 }
 0x321   : > { %p1161_p6 = pnand %p1160_p7, %p1154_p3 }
 0x323   : > { %1164 = shalt.err (!%p1161_p6)
}
 0x324   : > { %s1165_s23 = scalar_lea.hbm %s1517_s10, 128  ;;  %s1169_s0 = scalar_lea.hbm %s1584_s7, 512 }
 0x325   : > { %p1166_p8 = scmp.ne.s32.totalorder %s1517_s10, %s1165_s23  ;;  %p1170_p5 = scmp.lt.u32.totalorder %s1517_s10, %s1584_s7 }
 0x326   : > { %p1171_p2 = scmp.lt.u32.totalorder %s1169_s0, %s1165_s23  ;;  %p1173_p12 = scmp.lt.u32.totalorder %s1165_s23, %s1517_s10 }
 0x327   : > { %p1167_p9 = pnand %p1166_p8, %p1607_p1 }
 0x328   : > { %p1172_p4 = por %p1171_p2, %p1170_p5 }
 0x329   : > { %p1168_p10 = pneg %p1167_p9 }
 0x32a   : > { %p1174_p0 = por %p1173_p12, %p1172_p4 }
 0x32c   : > { %p1175_p3 = pnand %p1174_p0, %p1168_p10 }
 0x32e   : > { %1178 = shalt.err (!%p1175_p3)
}
 0x32f   : > { %994 = dma.vmem_to_hbm [thread:$0]  (%p1607_p1), %s752_s30, 128, %s1517_s10, %s725_s22  }
 0x330 PF: > { %p1015_p11 = scmp.ge.s32.totalorder %s1225_s29, 2  ;;  %s763_s13 = sand.u32 1, %s1213_s26  }
 0x331   : > { %p1608_p13 = scmp.ne.s32.totalorder %s1594_s15, 0  ;;  %s764_s11 = scalar_lea.sflag [#allocation6], %s763_s13 }
 0x333   : > { %p1006_p7 = pnand %p1015_p11, %p1608_p13 }
 0x335   : > { %1204 = dma.done.wait (!%p1006_p7), %s764_s11, 128  }
 0x336   : > { %1206 = vsyncadd (!%p1006_p7), %s764_s11, 4294967168  ;;  %s773_s21 = scalar_lea.sflag [#allocation11], %s763_s13 }
 0x337   : > { %1208 = dma.done.wait (!%p1006_p7), %s773_s21, 128  }
 0x338   : > { %1210 = vsyncadd (!%p1006_p7), %s773_s21, 4294967168  ;;  %s1609_s14 = sld [smem:[#allocation16_spill]]  ;;  %p26_p1 = scmp.ge.s32.totalorder %s1307_s8, 6  }
 0x339   : > { %s1610_s26 = smov %s1217_s27  ;;  %s1611_s27 = smov %s1221_s28 }
 0x33a   : > { %s1613_s29 = smov %s1307_s8  ;;  %28 = sbr.rel (!%p26_p1) target bundleno = 10 (0xa), region = 111 }
 0x33e   : > { %s1612_s28 = smov %s1609_s14 }
 0x341   :  { %778 = vsyncpa [#allocation5], 1 }
 0x342   :  { %780 = vsyncpa [#allocation5 + $0x1], 1 }
 0x343   :  { %781 = vsyncpa [#allocation8], 1 }
 0x344   :  { %783 = vsyncpa [#allocation8 + $0x1], 1 }
 0x345   :  { %784 = vsyncpa [#allocation6], 1 }
 0x346   :  { %786 = vsyncpa [#allocation6 + $0x1], 1 }
 0x347   :  { %787 = vsyncpa [#allocation11], 1 }
 0x348   :  { %789 = vsyncpa [#allocation11 + $0x1], 1 }

</bundles_post_ra>
